<compile_context>
chip_gen: v6e
topology: v6e:2x2x1
jax: 0.10.0
libtpu: 0.0.40
codegen_flags: <defaults>
</compile_context>

<pallas_src>
from functools import partial

import jax
import jax.numpy as jnp
from jax.experimental import pallas as pl
from jax.experimental.pallas import tpu as pltpu


def _round_up(v, m):
    return (v + m - 1) // m * m


# ---------------------------------------------------------------------------
# Kernel 1: edge message  edge = (rbf @ W_rbf) * x   (bf16 output stream)
# ---------------------------------------------------------------------------
def edge_message_kernel(rbf_ref, x_ref, w_rbf_ref, edge_ref):
    m = jnp.dot(rbf_ref[...].astype(jnp.bfloat16), w_rbf_ref[...],
                preferred_element_type=jnp.float32)
    edge_ref[...] = (m * x_ref[...].astype(jnp.float32)).astype(jnp.bfloat16)


# ---------------------------------------------------------------------------
# Kernel 2: block-sparse one-hot MXU scatter + fused output MLP
# ---------------------------------------------------------------------------
def scatter_mlp_kernel(cnt_ref, tbl_ref,               # SMEM scalar prefetch
                       seg_ref, edge_ref,              # CSR-gathered edge tiles
                       w_up_ref, w_lin_ref, b_lin_ref, w_out_ref,
                       o_ref,                          # [n_blk, O]
                       acc_ref,                        # VMEM [n_blk, Hp] f32
                       *, num_layers):
    n = pl.program_id(0)                               # node tile   (parallel)
    j = pl.program_id(1)                               # edge step   (arbitrary)
    n_blk = acc_ref.shape[0]
    e_blk = edge_ref.shape[0]

    @pl.when(j == 0)
    def _():
        acc_ref[...] = jnp.zeros_like(acc_ref)

    # Only edge blocks whose segment-id range intersects this node tile are
    # listed in the CSR table; steps past cnt[n] are dead (their index_map
    # repeats the previous block id, so no fresh DMA is issued either).
    @pl.when(j < cnt_ref[n])
    def _():
        # one-hot scatter: fold node_start into the 1-row seg vector (cheap)
        rel = seg_ref[...] - n * n_blk                          # [1, e_blk]
        rows = jax.lax.broadcasted_iota(jnp.int32, (n_blk, e_blk), 0)
        onehot = (rows == rel).astype(jnp.bfloat16)             # exact 0/1
        acc_ref[...] += jnp.dot(onehot, edge_ref[...],
                                preferred_element_type=jnp.float32)

    # epilogue on the last edge step: up-proj, SiLU MLP, output projection
    @pl.when(j == pl.num_programs(1) - 1)
    def _():
        h = jnp.dot(acc_ref[...].astype(jnp.bfloat16), w_up_ref[...],
                    preferred_element_type=jnp.float32)
        for l in range(num_layers):                             # static unroll
            z = jnp.dot(h.astype(jnp.bfloat16), w_lin_ref[l],
                        preferred_element_type=jnp.float32) + b_lin_ref[l]
            h = z * jax.nn.sigmoid(z)                           # SiLU (f32/EUP)
        o_ref[...] = jnp.dot(h.astype(jnp.bfloat16), w_out_ref[...],
                             preferred_element_type=jnp.float32
                             ).astype(o_ref.dtype)


def output_pp_block(x, rbf, i, num_nodes, params, num_layers,
                    n_blk=1024, e_blk=1024):
    """x: [E, H] f32, rbf: [E, R] f32, i: [E] int; returns [num_nodes, O] f32."""
    E, H = x.shape
    R = rbf.shape[1]
    F = params["w_up"].shape[1]
    O = params["w_out"].shape[1]

    Hp = _round_up(H, 128)
    Fp = _round_up(F, 128)

    # node tiling (multiple of 8). For v7x megacore pick n_blk <= num_nodes/2
    # so the "parallel" node axis keeps >= 2 tiles to shard across both TCs.
    n_blk = max(8, min(n_blk, _round_up(num_nodes, 8)))
    Np = _round_up(num_nodes, n_blk)
    n_n_tiles = Np // n_blk

    # edge tiling (multiple of 128 so the (1, e_blk) seg block is lane-legal)
    e_blk = min(e_blk, _round_up(E, 128))
    Ep = _round_up(E, e_blk)
    n_e_tiles = Ep // e_blk

    f32, bf16 = jnp.float32, jnp.bfloat16

    # ---- pad streams / weights (bf16 streams + weights, f32 biases) -------
    xp = jnp.zeros((Ep, Hp), bf16).at[:E, :H].set(x.astype(bf16))
    rbfp = jnp.zeros((Ep, R), f32).at[:E, :].set(rbf.astype(f32))    # natural R
    seg = jnp.full((Ep,), -1, jnp.int32).at[:E].set(i.astype(jnp.int32))
    seg2d = seg.reshape(1, Ep)

    w_rbf = jnp.zeros((R, Hp), bf16).at[:, :H].set(params["w_rbf"].astype(bf16))
    w_up = jnp.zeros((Hp, Fp), bf16).at[:H, :F].set(params["w_up"].astype(bf16))
    w_lins = jnp.zeros((num_layers, Fp, Fp), bf16).at[:, :F, :F].set(
        params["w_lins"].astype(bf16))
    b_lins = jnp.zeros((num_layers, 1, Fp), f32).at[:, :, :F].set(
        params["b_lins"].astype(f32))
    w_out = jnp.zeros((Fp, O), bf16).at[:F, :].set(params["w_out"].astype(bf16))

    # ---- kernel 1: edge messages, streamed once over the edge axis --------
    edge = pl.pallas_call(
        edge_message_kernel,
        out_shape=jax.ShapeDtypeStruct((Ep, Hp), bf16),
        grid=(n_e_tiles,),
        in_specs=[
            pl.BlockSpec((e_blk, R), lambda e: (e, 0)),       # rbf (natural R)
            pl.BlockSpec((e_blk, Hp), lambda e: (e, 0)),      # x (bf16)
            pl.BlockSpec((R, Hp), lambda e: (0, 0)),          # W_rbf (resident)
        ],
        out_specs=pl.BlockSpec((e_blk, Hp), lambda e: (e, 0)),
        compiler_params=pltpu.CompilerParams(
            dimension_semantics=("parallel",)),
    )(rbfp, xp, w_rbf)

    # ---- CSR-over-blocks table: which edge blocks touch which node tile ---
    valid = jnp.arange(Ep) < E
    blk_min = jnp.where(valid, seg, jnp.iinfo(jnp.int32).max) \
                 .reshape(n_e_tiles, e_blk).min(axis=1)
    blk_max = jnp.where(valid, seg, -1).reshape(n_e_tiles, e_blk).max(axis=1)
    tile_lo = jnp.arange(n_n_tiles) * n_blk
    hit = jnp.logical_and(blk_max[None, :] >= tile_lo[:, None],
                          blk_min[None, :] < tile_lo[:, None] + n_blk)
    cnt = hit.sum(axis=1).astype(jnp.int32)                    # [n_n_tiles]
    order = jnp.argsort(jnp.logical_not(hit).astype(jnp.int32),
                        axis=1, stable=True)                   # hits first
    col = jnp.minimum(jnp.arange(n_e_tiles)[None, :],
                      jnp.maximum(cnt[:, None] - 1, 0))        # repeat last hit
    tbl_flat = jnp.take_along_axis(order, col, axis=1).astype(jnp.int32) \
                  .reshape(-1)                                 # [n_tiles*e_tiles]

    # ---- kernel 2: scatter + MLP ------------------------------------------
    kernel = partial(scatter_mlp_kernel, num_layers=num_layers)

    def edge_block_map(n, j, cnt_ref, tbl_ref):
        return (tbl_ref[n * n_e_tiles + j], 0)

    def seg_block_map(n, j, cnt_ref, tbl_ref):
        return (0, tbl_ref[n * n_e_tiles + j])

    grid_spec = pltpu.PrefetchScalarGridSpec(
        num_scalar_prefetch=2,
        grid=(n_n_tiles, n_e_tiles),
        in_specs=[
            pl.BlockSpec((1, e_blk), seg_block_map),                 # seg ids
            pl.BlockSpec((e_blk, Hp), edge_block_map),               # edge msgs
            # resident weights: constant block index -> DMA'd once
            pl.BlockSpec((Hp, Fp), lambda n, j, *_: (0, 0)),         # W_up
            pl.BlockSpec((num_layers, Fp, Fp), lambda n, j, *_: (0, 0, 0)),
            pl.BlockSpec((num_layers, 1, Fp), lambda n, j, *_: (0, 0, 0)),
            pl.BlockSpec((Fp, O), lambda n, j, *_: (0, 0)),          # W_out
        ],
        out_specs=pl.BlockSpec((n_blk, O), lambda n, j, *_: (n, 0)),
        scratch_shapes=[pltpu.VMEM((n_blk, Hp), jnp.float32)],
    )

    # VMEM footprint (default double-buffering on inputs) + margin for
    # epilogue intermediates; cap at 64 MiB so it is valid per v7x TC too.
    bytes_weights = 2 * (Hp * Fp + num_layers * Fp * Fp + Fp * O)   # bf16
    bytes_bias = 4 * num_layers * Fp
    bytes_edge_buf = 2 * e_blk * Hp + 4 * e_blk
    bytes_acc = 4 * n_blk * Hp
    bytes_out = 4 * n_blk * O
    footprint = (2 * (bytes_weights + bytes_bias) + 2 * bytes_edge_buf
                 + bytes_acc + 2 * bytes_out)
    vmem_limit = int(min(64 * 1024 * 1024,
                         max(2 * footprint + 8 * 1024 * 1024,
                             16 * 1024 * 1024)))

    flops = (2 * Np * Ep * Hp                       # one-hot scatter (upper bound)
             + 2 * Np * Hp * Fp
             + num_layers * 2 * Np * Fp * Fp
             + 2 * Np * Fp * O)
    bytes_accessed = (Ep * (2 * Hp + 4)             # edge + seg stream (sorted)
                      + 2 * (Hp * Fp + num_layers * Fp * Fp + Fp * O)
                      + 4 * num_layers * Fp + 4 * Np * O)
    cost = pl.CostEstimate(flops=flops,
                           transcendentals=num_layers * Np * Fp,
                           bytes_accessed=bytes_accessed)

    out = pl.pallas_call(
        kernel,
        out_shape=jax.ShapeDtypeStruct((Np, O), jnp.float32),
        grid_spec=grid_spec,
        compiler_params=pltpu.CompilerParams(
            dimension_semantics=("parallel", "arbitrary"),
            vmem_limit_bytes=vmem_limit),
        cost_estimate=cost,
    )(cnt, tbl_flat, seg2d, edge, w_up, w_lins, b_lins, w_out)

    return out[:num_nodes, :]


def make_params(key, num_radial, hidden, out_emb, out_ch, num_layers):
    # Deterministic synthetic init (stand-in for glorot_orthogonal; forward
    # semantics do not depend on the init scheme).
    k = jax.random.split(key, 4)
    scale = 0.1
    w_rbf = scale * jax.random.normal(k[0], (num_radial, hidden), jnp.float32)
    w_up = scale * jax.random.normal(k[1], (hidden, out_emb), jnp.float32)
    w_lins = scale * jax.random.normal(k[2], (num_layers, out_emb, out_emb),
                                       jnp.float32)
    b_lins = jnp.zeros((num_layers, 1, out_emb), jnp.float32)
    # NOTE: module default output_initializer='zeros' would give w_out = 0;
    # use nonzero deterministic values so the correctness check is meaningful.
    w_out = scale * jax.random.normal(k[3], (out_emb, out_ch), jnp.float32)
    return dict(w_rbf=w_rbf, w_up=w_up, w_lins=w_lins, b_lins=b_lins,
                w_out=w_out)


def reference(x, rbf, i, num_nodes, params, num_layers):
    edge = (rbf @ params["w_rbf"]) * x
    node = jax.ops.segment_sum(edge, i, num_segments=num_nodes)
    h = node @ params["w_up"]
    for l in range(num_layers):
        z = h @ params["w_lins"][l] + params["b_lins"][l]
        h = jax.nn.silu(z)
    return h @ params["w_out"]


if __name__ == "__main__":
    # Small shapes consistent with the module (E edges scattered onto N nodes).
    # Sorted segment ids + small tiles exercise the CSR block-skip path.
    E, N = 300, 24
    num_radial, hidden, out_emb, out_ch, num_layers = 6, 32, 64, 13, 3

    key = jax.random.PRNGKey(0)
    kx, kr, ki, kp = jax.random.split(key, 4)

    x = jax.random.normal(kx, (E, hidden), jnp.float32)
    rbf = jax.random.normal(kr, (E, num_radial), jnp.float32)
    i = jnp.sort(jax.random.randint(ki, (E,), 0, N, jnp.int32))
    params = make_params(kp, num_radial, hidden, out_emb, out_ch, num_layers)

    out = output_pp_block(x, rbf, i, N, params, num_layers, n_blk=8, e_blk=128)
    out = jax.block_until_ready(out)

    ref = reference(x, rbf, i, N, params, num_layers)
    assert out.shape == (N, out_ch)
    # bf16 streams / MXU operands (f32 accumulation) -> loosened tolerance.
    rel_err = jnp.max(jnp.abs(out - ref)) / (jnp.max(jnp.abs(ref)) + 1e-6)
    assert float(rel_err) < 5e-2, f"mismatch vs reference (rel_err={rel_err})"

    print("KERNEL_OK")
</pallas_src>

<mosaic_0001>
module attributes {stable_mosaic.version = 11 : i64} {
  func.func @edge_message_kernel(%arg0: i32, %arg1: memref<128x6xf32, #tpu.memory_space<vmem>>, %arg2: memref<128x128xbf16, #tpu.memory_space<vmem>>, %arg3: memref<6x128xbf16, #tpu.memory_space<vmem>>, %arg4: memref<128x128xbf16, #tpu.memory_space<vmem>>) attributes {dimension_semantics = [#tpu.dimension_semantics<parallel>], iteration_bounds = array<i64: 3>, scalar_prefetch = 0 : i64, scratch_operands = 0 : i64, tpu.core_type = #tpu.core_type<tc>, window_params = [{transform_indices = @transform_0, window_bounds = array<i64: 128, 6>}, {transform_indices = @transform_1, window_bounds = array<i64: 128, 128>}, {pipeline_mode = #tpu.pipeline_mode<synchronous>, transform_indices = @transform_2, window_bounds = array<i64: 6, 128>}, {transform_indices = @transform_3, window_bounds = array<i64: 128, 128>}]} {
    %c0 = arith.constant 0 : index
    %c0_0 = arith.constant 0 : index
    %0 = vector.load %arg1[%c0, %c0_0] : memref<128x6xf32, #tpu.memory_space<vmem>>, vector<128x6xf32>
    %1 = arith.truncf %0 : vector<128x6xf32> to vector<128x6xbf16>
    %c0_1 = arith.constant 0 : index
    %c0_2 = arith.constant 0 : index
    %2 = vector.load %arg3[%c0_1, %c0_2] : memref<6x128xbf16, #tpu.memory_space<vmem>>, vector<6x128xbf16>
    %cst = arith.constant dense<0.000000e+00> : vector<128x128xf32>
    %3 = tpu.matmul %1, %2, %cst {dimension_numbers = #tpu.dot_dimension_numbers<[1], [0], [0], [1], [0, 0, 1, 1], [], []>} : vector<128x6xbf16>, vector<6x128xbf16>, vector<128x128xf32> -> vector<128x128xf32>
    %c0_3 = arith.constant 0 : index
    %c0_4 = arith.constant 0 : index
    %4 = vector.load %arg2[%c0_3, %c0_4] : memref<128x128xbf16, #tpu.memory_space<vmem>>, vector<128x128xbf16>
    %5 = arith.extf %4 : vector<128x128xbf16> to vector<128x128xf32>
    %6 = arith.mulf %3, %5 : vector<128x128xf32>
    %7 = arith.truncf %6 : vector<128x128xf32> to vector<128x128xbf16>
    %c0_5 = arith.constant 0 : index
    %c0_6 = arith.constant 0 : index
    %8 = vector.load %arg4[%c0_5, %c0_6] : memref<128x128xbf16, #tpu.memory_space<vmem>>, vector<128x128xbf16>
    tpu.vector_store %arg4[%c0_5, %c0_6], %7 {strides = array<i32>} : memref<128x128xbf16, #tpu.memory_space<vmem>>, vector<128x128xbf16>,
    return
  }
  func.func @transform_0(%arg0: i32) -> (i32, i32) {
    %c0_i32 = arith.constant 0 : i32
    %c0_i32_0 = arith.constant 0 : i32
    return %arg0, %c0_i32 : i32, i32
  }
  func.func @transform_1(%arg0: i32) -> (i32, i32) {
    %c0_i32 = arith.constant 0 : i32
    %c0_i32_0 = arith.constant 0 : i32
    return %arg0, %c0_i32 : i32, i32
  }
  func.func @transform_2(%arg0: i32) -> (i32, i32) {
    %c0_i32 = arith.constant 0 : i32
    %c0_i32_0 = arith.constant 0 : i32
    %c0_i32_1 = arith.constant 0 : i32
    return %c0_i32, %c0_i32_0 : i32, i32
  }
  func.func @transform_3(%arg0: i32) -> (i32, i32) {
    %c0_i32 = arith.constant 0 : i32
    %c0_i32_0 = arith.constant 0 : i32
    return %arg0, %c0_i32 : i32, i32
  }
}

</mosaic_0001>

<bundles_post_ra>
// kernel: tpu_custom_call.1
= control target key start
LH: loop header
LB: loop body
LE: loop exit
PB: predicated region body
PF: predicated region fallthrough
CT: control target
= control target key end

     0   :  { %8 = vsyncpa [#allocation3], 0  ;;  %s1004_s0 = inlined_call_operand.vmem [shape: f32[384,6], index: 0, kind: input, shape index: {}]   ;;  %s1005_s1 = inlined_call_operand.vmem [shape: bf16[384,128], index: 1, kind: input, shape index: {}]   ;;  %s1006_s2 = inlined_call_operand.vmem [shape: bf16[6,128], index: 2, kind: input, shape index: {}]   ;;  %s1007_s3 = inlined_call_operand.hbm [shape: bf16[384,128], index: 3, kind: output, shape index: {}]  }
   0x1   :  { %10 = vsyncpa [#allocation3 + $0x1], 0  ;;  %s860_s12 = smov 0   ;;  %s862_s13 = smov 0  }
   0x2   :  { %s864_s14 = smov 0   ;;  %s866_s15 = smov 0  }
   0x3 LB: > { %s881_s16 = sadd.s32 4294967295, %s835_s15   ;;  %s562_s17 = sadd.s32 4294967294, %s835_s15   ;;  %s835_s15 = sphi %s866_s15, %s1013_s15   ;;  %s831_s14 = sphi %s864_s14, %s1012_s14   ;;  %s827_s13 = sphi %s862_s13, %s1011_s13   ;;  %s823_s12 = sphi %s860_s12, %s1010_s12  }
   0x4   : > { %s885_s18 = sadd.s32 1, %s835_s15   ;;  %s96_s19 = sadd.s32 1, %s831_s14 }
   0x5   : > { %s93_s20 = ssub.s32 %s835_s15, %s885_s18  ;;  %p106_p0 = scmp.ne.s32.totalorder %s831_s14, %s827_s13 }
   0x6   : > { %p94_p1 = scmp.eq.s32.totalorder %s93_s20, 0  ;;  %p107_p2 = scmp.eq.s32.totalorder %s881_s16, 2 }
   0x7   : > { %p112_p3 = scmp.ne.s32.totalorder %s827_s13, %s823_s12  ;;  %p113_p4 = scmp.eq.s32.totalorder %s562_s17, 2 }
   0x8   : > { %s896_s21 = scalar_select %p94_p1, %s831_s14, %s96_s19  }
   0x9   : > { %p898_p5 = por %p107_p2, %p106_p0  ;;  %p902_p6 = por %p113_p4, %p112_p3 }
   0xa   : > { %p565_p7 = scmp.ge.s32.totalorder %s835_s15, 1  ;;  %p152_p8 = scmp.lt.s32.totalorder %s835_s15, 4 }
   0xc   : > { %p153_p9 = pnand %p565_p7, %p152_p8 }
   0xd   : > { %s567_s26 = sshll.u32 (!%p153_p9), %s881_s16, 4  ;;  %s178_s8 = sand.u32 (!%p153_p9), 1, %s827_s13  }
   0xe   : > { %156 = sbr.rel (%p153_p9) target bundleno = 252 (0xfc), region = 32  ;;  %p182_p10 = scmp.lt.s32.totalorder (!%p153_p9), %s567_s26, 47 }
   0xf   : > { %s566_s9 = sshll.u32 (!%p153_p9), %s178_s8, 6  ;;  %s616_s11 = sshll.u32 (!%p153_p9), %s881_s16, 10 }
  0x10   : > { %s942_s10 = scalar_lea.vmem (!%p153_p9), [#allocation2], %s566_s9  ;;  %s955_s24 = scalar_lea.hbm (!%p153_p9), %s1007_s3, %s616_s11 }
  0x11   : > { %s488_s17 = sshll.u32 (!%p153_p9), %s942_s10, 4  ;;  %s964_s16 = scalar_lea.sflag (!%p153_p9), [#allocation3], %s178_s8  ;;  %s957_s17 = int_to_ptr.vmem [resolvable:$true] %s488_s17 }
  0x12   : > { %s775_s25 = scalar_lea.vmem (!%p153_p9), %s957_s17, 1024 }
  0x13   : > { %v219_v0 = vld [vmem:[%s1006_s2] sm:$0x7]  ;;  %vm245_vm0 = vcmask 1042432   ;;  %s1015_s26 = smov (!%p182_p10, %s567_s26), 47  ;;  %vm220_vm1 = vcmask 48128   ;;  %p776_p11 = scmp.ne.s32.totalorder %s957_s17, %s775_s25 }
  0x14   : > { %732 = vmatprep.subr.msk.bf16.mxu0 %vm245_vm0, %v219_v0  ;;  %733 = vmatprep.subr.msk.bf16.mxu1 %vm245_vm0, %v219_v0  ;;  %v247_v1 = vsel %vm245_vm0, %v219_v0, 0  ;;  %s568_s27 = sshll.u32 %s1015_s26, 3  ;;  %s570_s4 = sshll.u32 %s1015_s26, 2 }
  0x15   : > { %713 = vmatpush3.bf16.msra.mxu0 %v247_v1  ;;  %731 = vmatpush3.bf16.msra.mxu1 %v247_v1  ;;  %s185_s30 = scalar_lea.vmem %s1004_s0, %s568_s27  ;;  %s930_s7 = scalar_lea.vmem %s1005_s1, %s570_s4 }
  0x16   : > { %v195_v2 = vld [vmem:[%s185_s30] sm:$0xff]  ;;  %v196_v3 = vld [vmem:[%s185_s30 + $0x8] sm:$0xff]  ;;  %v197_v7 = vld [vmem:[%s185_s30 + $0x10] sm:$0xff]  ;;  %p777_p12 = pnand %p776_p11, %p898_p5  ;;  %s837_s26 = smov [#allocation2]  }
  0x17   : > { %v203_v4 = vld [vmem:[%s185_s30 + $0x40] sm:$0xff]  ;;  %v211_v5 = vpack.c.bf16 %v196_v3, %v195_v2  ;;  %v204_v6 = vld [vmem:[%s185_s30 + $0x48] sm:$0xff]  ;;  %v198_v8 = vld [vmem:[%s185_s30 + $0x18] sm:$0xff]  ;;  %s779_s27 = sshll.u32 %s837_s26, 4  ;;  %s780_s27 = int_to_ptr.vmem [resolvable:$false] %s779_s27 }
  0x18   : > { %v215_v9 = vpack.c.bf16 %v204_v6, %v203_v4  ;;  %v212_v10 = vpack.c.bf16 %v198_v8, %v197_v7  ;;  %v205_v11 = vld [vmem:[%s185_s30 + $0x50] sm:$0xff]  ;;  %v206_v12 = vld [vmem:[%s185_s30 + $0x58] sm:$0xff]  ;;  %v199_v13 = vld [vmem:[%s185_s30 + $0x20] sm:$0xff]  ;;  %p778_p13 = pneg %p777_p12  ;;  %s781_s28 = scalar_lea.vmem %s780_s27, 2048 }
  0x19   : > { %714 = vmatprep.mubr.msk.bf16.mxu0 %vm220_vm1, %v211_v5  ;;  %v216_v14 = vpack.c.bf16 %v206_v12, %v205_v11  ;;  %v200_v15 = vld [vmem:[%s185_s30 + $0x28] sm:$0xff]  ;;  %v207_v16 = vld [vmem:[%s185_s30 + $0x60] sm:$0xff]  ;;  %v201_v20 = vld [vmem:[%s185_s30 + $0x30] sm:$0xff]  ;;  %p782_p0 = scmp.lt.s32.totalorder %s957_s17, %s780_s27  ;;  %p783_p1 = scmp.lt.s32.totalorder %s781_s28, %s775_s25 }
  0x1a   : > { %v208_v17 = vld [vmem:[%s185_s30 + $0x68] sm:$0xff]  ;;  %722 = vmatprep.mubr.msk.bf16.mxu1 %vm220_vm1, %v215_v9  ;;  %715 = vmatmul.mubr.msk.bf16.vlgmr.msra.gmra.mxu0 %vm220_vm1, %v212_v10  ;;  %v213_v18 = vpack.c.bf16 %v200_v15, %v199_v13  ;;  %v202_v21 = vld [vmem:[%s185_s30 + $0x38] sm:$0xff]  ;;  %v209_v22 = vld [vmem:[%s185_s30 + $0x70] sm:$0xff] }
  0x1b   : > { %v217_v19 = vpack.c.bf16 %v208_v17, %v207_v16  ;;  %723 = vmatmul.mubr.msk.bf16.vlgmr.msra.gmra.mxu1 %vm220_vm1, %v216_v14  ;;  %v210_v23 = vld [vmem:[%s185_s30 + $0x78] sm:$0xff]  ;;  %v214_v24 = vpack.c.bf16 %v202_v21, %v201_v20  ;;  %v689_v26 = vld [vmem:[%s930_s7 + $0x8] sm:$0xff]   ;;  %v618_v29 = vld [vmem:[%s930_s7] sm:$0xff]   ;;  %p784_p2 = por %p783_p1, %p782_p0 }
  0x1c   : > { %718 = vmatprep.mubr.msk.bf16.mxu0 %vm220_vm1, %v213_v18  ;;  %v218_v25 = vpack.c.bf16 %v210_v23, %v209_v22  ;;  %v693_v27 = vld [vmem:[%s930_s7 + $0x28] sm:$0xff]   ;;  %v623_v30 = vunpack.c.l.bf16 %v689_v26  ;;  %v692_v32 = vld [vmem:[%s930_s7 + $0x20] sm:$0xff]   ;;  %v624_v33 = vunpack.c.h.bf16 %v689_v26  ;;  %v619_v37 = vunpack.c.l.bf16 %v618_v29  ;;  %v691_v49 = vld [vmem:[%s930_s7 + $0x18] sm:$0xff]  }
  0x1d   : > { %726 = vmatprep.mubr.msk.bf16.mxu1 %vm220_vm1, %v217_v19  ;;  %v639_v34 = vunpack.c.l.bf16 %v693_v27  ;;  %v640_v36 = vunpack.c.h.bf16 %v693_v27  ;;  %v620_v39 = vunpack.c.h.bf16 %v618_v29  ;;  %v635_v40 = vunpack.c.l.bf16 %v692_v32  ;;  %v695_v54 = vld [vmem:[%s930_s7 + $0x38] sm:$0xff]   ;;  %v690_v59 = vld [vmem:[%s930_s7 + $0x10] sm:$0xff]   ;;  %p785_p3 = pnand %p784_p2, %p778_p13 }
  0x1e   : > { %v636_v42 = vunpack.c.h.bf16 %v692_v32  ;;  %v631_v61 = vunpack.c.l.bf16 %v691_v49  ;;  %v694_v63 = vld [vmem:[%s930_s7 + $0x30] sm:$0xff]   ;;  %v632_v0 = vunpack.c.h.bf16 %v691_v49  ;;  %v647_v2 = vunpack.c.l.bf16 %v695_v54 }
  0x1f   : > { %v648_v4 = vunpack.c.h.bf16 %v695_v54  ;;  %v627_v5 = vunpack.c.l.bf16 %v690_v59  ;;  %v628_v7 = vunpack.c.h.bf16 %v690_v59  ;;  %v643_v8 = vunpack.c.l.bf16 %v694_v63 }
  0x20   : > { %v644_v10 = vunpack.c.h.bf16 %v694_v63 }
  0x22   : > { %719 = vmatmul.mubr.msk.bf16.gmra.mxu0 %vm220_vm1, %v214_v24 }
  0x23   : > { %727 = vmatmul.mubr.msk.bf16.gmra.mxu1 %vm220_vm1, %v218_v25 }
  0xda   : > { %v716_v28 = vpop.f32.mrf.mxu0 }
  0xdb   : > { %v724_v31 = vpop.f32.mrf.mxu1  ;;  %v380_v43 = vmul.f32 %v716_v28, %v623_v30 }
  0xdc   : > { %v283_v35 = vpop.f32.mrf.mxu0  ;;  %v388_v46 = vmul.f32 %v724_v31, %v639_v34 }
  0xdd   : > { %v315_v38 = vpop.f32.mrf.mxu1  ;;  %v378_v50 = vmul.f32 %v619_v37, %v283_v35 }
  0xde   : > { %v717_v41 = vpop.f32.mrf.mxu0  ;;  %v386_v55 = vmul.f32 %v635_v40, %v315_v38 }
  0xdf   : > { %v381_v44 = vmul.f32 %v717_v41, %v624_v33  ;;  %v725_v45 = vpop.f32.mrf.mxu1 }
  0xe0   : > { %v389_v47 = vmul.f32 %v725_v45, %v640_v36  ;;  %v286_v48 = vpop.f32.mrf.mxu0 }
  0xe1   : > { %v657_v51 = vpack.c.bf16 %v381_v44, %v380_v43  ;;  %v379_v52 = vmul.f32 %v620_v39, %v286_v48  ;;  %v318_v53 = vpop.f32.mrf.mxu1 }
  0xe2   : > { %v677_v56 = vpack.c.bf16 %v389_v47, %v388_v46  ;;  %v387_v57 = vmul.f32 %v636_v42, %v318_v53  ;;  %v720_v58 = vpop.f32.mrf.mxu0 }
  0xe3   : > { %696 = vst [vmem:[%s942_s10 + $0x8] sm:$0xff] %v657_v51   ;;  %v652_v60 = vpack.c.bf16 %v379_v52, %v378_v50  ;;  %v728_v62 = vpop.f32.mrf.mxu1  ;;  %v384_v11 = vmul.f32 %v720_v58, %v631_v61 }
  0xe4   : > { %700 = vst [vmem:[%s942_s10 + $0x28] sm:$0xff] %v677_v56   ;;  %v672_v1 = vpack.c.bf16 %v387_v57, %v386_v55  ;;  %v299_v3 = vpop.f32.mrf.mxu0  ;;  %v392_v14 = vmul.f32 %v728_v62, %v647_v2 }
  0xe5   : > { %653 = vst [vmem:[%s942_s10] sm:$0xff] %v652_v60   ;;  %v331_v6 = vpop.f32.mrf.mxu1  ;;  %v382_v17 = vmul.f32 %v627_v5, %v299_v3 }
  0xe6   : > { %699 = vst [vmem:[%s942_s10 + $0x20] sm:$0xff] %v672_v1   ;;  %v721_v9 = vpop.f32.mrf.mxu0  ;;  %v390_v21 = vmul.f32 %v643_v8, %v331_v6 }
  0xe7   : > { %v385_v12 = vmul.f32 %v721_v9, %v632_v0  ;;  %v729_v13 = vpop.f32.mrf.mxu1 }
  0xe8   : > { %v393_v15 = vmul.f32 %v729_v13, %v648_v4  ;;  %v302_v16 = vpop.f32.mrf.mxu0 }
  0xe9   : > { %v667_v18 = vpack.c.bf16 %v385_v12, %v384_v11  ;;  %v383_v19 = vmul.f32 %v628_v7, %v302_v16  ;;  %v334_v20 = vpop.f32.mrf.mxu1 }
  0xea   : > { %v687_v22 = vpack.c.bf16 %v393_v15, %v392_v14  ;;  %v391_v23 = vmul.f32 %v644_v10, %v334_v20 }
  0xeb   : > { %698 = vst [vmem:[%s942_s10 + $0x18] sm:$0xff] %v667_v18   ;;  %v662_v24 = vpack.c.bf16 %v383_v19, %v382_v17 }
  0xec   : > { %702 = vst [vmem:[%s942_s10 + $0x38] sm:$0xff] %v687_v22   ;;  %v682_v25 = vpack.c.bf16 %v391_v23, %v390_v21 }
  0xed   : > { %697 = vst [vmem:[%s942_s10 + $0x10] sm:$0xff] %v662_v24  }
  0xee   : > { %701 = vst [vmem:[%s942_s10 + $0x30] sm:$0xff] %v682_v25  }
  0xef   : > { %788 = shalt.err (!%p785_p3)
}
  0xf0   : > { %s789_s29 = scalar_lea.hbm %s955_s24, 1024  ;;  %s793_s5 = scalar_lea.hbm %s1007_s3, 3072 }
  0xf1   : > { %p790_p4 = scmp.ne.s32.totalorder %s955_s24, %s789_s29  ;;  %p794_p9 = scmp.lt.s32.totalorder %s955_s24, %s1007_s3 }
  0xf2   : > { %p795_p10 = scmp.lt.s32.totalorder %s793_s5, %s789_s29 }
  0xf3   : > { %p791_p7 = pnand %p790_p4, %p898_p5 }
  0xf4   : > { %p796_p11 = por %p795_p10, %p794_p9 }
  0xf5   : > { %p792_p8 = pneg %p791_p7 }
  0xf7   : > { %p797_p12 = pnand %p796_p11, %p792_p8 }
  0xf9   : > { %800 = shalt.err (!%p797_p12)
}
  0xfa   : > { %s838_s8 = smov 64   ;;  %s839_s9 = smov 4  }
  0xfb   : > { %734 = dma.vmem_to_hbm [thread:$0]  (%p898_p5), %s957_s17, 1024, %s955_s24, %s964_s16, %s838_s8, %s838_s8, %s839_s9  }
  0xfc PF: > { %p740_p13 = scmp.ge.s32.totalorder %s835_s15, 2  ;;  %s503_s10 = sand.u32 1, %s823_s12  }
  0xfd   : > { %s504_s11 = scalar_lea.sflag [#allocation3], %s503_s10 }
  0xfe   : > { %p737_p0 = pnand %p740_p13, %p902_p6 }
 0x100   : > { %p738_p1 = pneg %p737_p0 }
 0x102   : > { %818 = dma.done.wait (%p738_p1), %s504_s11, 1024  }
 0x103   : > { %820 = vsyncadd (%p738_p1), %s504_s11, 4294966272  ;;  %p13_p2 = scmp.ge.s32.totalorder %s885_s18, 5   ;;  %s1010_s12 = smov %s827_s13 }
 0x104   : > { %s1011_s13 = smov %s831_s14  ;;  %s1012_s14 = smov %s896_s21 }
 0x105   : > { %s1013_s15 = smov %s885_s18  ;;  %15 = sbr.rel (!%p13_p2) target bundleno = 3 (0x3), region = 70 }
 0x10a   :  { %509 = vsyncpa [#allocation3], 1 }
 0x10b   :  { %511 = vsyncpa [#allocation3 + $0x1], 1 }

</bundles_post_ra>
